<compile_context>
chip_gen: v7x
topology: tpu7x:2x2x1
jax: 0.10.0
libtpu: 0.0.40
codegen_flags: <defaults>
</compile_context>

<pallas_src>
import functools
import math

import jax
import jax.numpy as jnp
from jax.experimental import pallas as pl
from jax.experimental.pallas import tpu as pltpu


def _round_up(x, m):
    return ((x + m - 1) // m) * m


def _masked_community_kernel(x_ref, w_ref, o_ref, *, dip, hp):
    """Fused community forward on one batch tile.

    x_ref: (TB, DIP)              bf16 zero-padded input rows
    w_ref: (DIP + 2*HP + 16, HP)  bf16 row-stacked bundle:
           [w_ih ; (w_hh*mask) block-diag ; w_ro ; bias rows]
           bias rows: 0 = b_ih, 1 = b_hh*mask_b, 2 = sum_a b_ro, rest zero pad
    o_ref: (TB, HP)               f32 lane-dense output slab (cols [:D_out] valid)
    """
    x = x_ref[...]

    # Static, tile-aligned row slices of the single weight bundle.
    w_ih = w_ref[:dip, :]
    w_hh = w_ref[dip:dip + hp, :]
    w_ro = w_ref[dip + hp:dip + 2 * hp, :]
    bias = w_ref[dip + 2 * hp:, :]
    b_ih = bias[0:1, :].astype(jnp.float32)
    b_hh = bias[1:2, :].astype(jnp.float32)
    b_ro = bias[2:3, :].astype(jnp.float32)

    # bf16 MXU operands, f32 accumulation; tanh / bias adds stay f32 (VPU/EUP).
    # Input layer ('ih', unmasked: include_ih=False) -- all agents at once.
    h1 = jnp.tanh(jnp.dot(x, w_ih, preferred_element_type=jnp.float32) + b_ih)

    # Hidden layer ('hh'): mask already fused into the block-diagonal weights
    # and the bias row by the wrapper. Block-diag keeps agents independent.
    h2 = jnp.tanh(
        jnp.dot(h1.astype(w_hh.dtype), w_hh,
                preferred_element_type=jnp.float32) + b_hh)

    # Readout (unmasked: include_readout=False). Vertically stacked per-agent
    # readout weights fold the sum over agents into this single matmul.
    o_ref[...] = jnp.dot(h2.astype(w_ro.dtype), w_ro,
                         preferred_element_type=jnp.float32) + b_ro


def _global_threshold(scores, sparsity):
    """GetSubnet_global threshold: keep the top `sparsity` fraction of ALL
    maskable score entries (scores >= thr)."""
    flat = jnp.concatenate([scores["w_hh"].reshape(-1),
                            scores["b_hh"].reshape(-1)])
    n = flat.shape[0]
    j = int((1.0 - sparsity) * n)
    k = max(1, min(n, n - j))
    # kth-largest == sorted(flat)[j]; top_k avoids a full sort.
    # TODO(synk): exact tie / sparsity->0 semantics of the original
    # GetSubnet_global are unknown (its code was not provided).
    return jax.lax.top_k(flat, k)[0][-1]


def pack_static(params):
    """Score-independent packed layout, computed ONCE per parameter set."""
    A, D_in, H = params["w_ih"].shape
    D_out = params["w_ro"].shape[-1]
    AH = A * H
    HP = max(128, _round_up(AH, 128), _round_up(D_out, 128))   # lane width
    DIP = _round_up(D_in, 16)                                  # bf16 sublane tile
    rows = DIP + 2 * HP + 16                                   # +16-row bias slab
    f32, bf16 = jnp.float32, jnp.bfloat16

    bundle = jnp.zeros((rows, HP), bf16)

    # w_ih: (A, D_in, H) -> (D_in, A*H); columns a*H:(a+1)*H belong to agent a.
    w_ih = jnp.moveaxis(params["w_ih"], 0, 1).reshape(D_in, AH)
    bundle = bundle.at[:D_in, :AH].set(w_ih.astype(bf16))

    # w_ro: (A, H, D_out) -> (A*H, D_out) stacked vertically (agent-sum folds
    # into the matmul). hh slot rows [DIP:DIP+HP) filled per call.
    w_ro = params["w_ro"].reshape(AH, D_out)
    bundle = bundle.at[DIP + HP:DIP + HP + AH, :D_out].set(w_ro.astype(bf16))

    # Bias rows: 0 = b_ih, 2 = sum_a b_ro; row 1 (masked b_hh) set per call.
    bundle = bundle.at[DIP + 2 * HP + 0, :AH].set(
        params["b_ih"].reshape(AH).astype(bf16))
    bundle = bundle.at[DIP + 2 * HP + 2, :D_out].set(
        params["b_ro"].sum(axis=0).reshape(D_out).astype(bf16))

    return {
        "bundle": bundle,
        "w_hh": params["w_hh"].astype(f32),
        "b_hh": params["b_hh"].astype(f32),
        "eye_a": jnp.eye(A, dtype=f32),
        "dims": (A, D_in, H, D_out, AH, HP, DIP, rows),
    }


def mask_community_forward(x, packed, scores, sparsity):
    """Forward of Mask_Community on the synthetic community (Pallas kernel)."""
    A, D_in, H, D_out, AH, HP, DIP, rows = packed["dims"]
    B = x.shape[0]
    f32, bf16 = jnp.float32, jnp.bfloat16

    # ---- global top-k subnet mask, fused into w_hh / b_hh in the wrapper ----
    thr = _global_threshold(scores, sparsity)
    mask_w = (scores["w_hh"] >= thr).astype(f32)        # (A, H, H)
    mask_b = (scores["b_hh"] >= thr).astype(f32)        # (A, 1, H)
    masked_w = packed["w_hh"] * mask_w                  # (A, H, H)
    masked_b = (packed["b_hh"] * mask_b).reshape(AH)    # (A*H,)

    # Block-diagonal (AH, AH) without a python loop: (A,H,1,H) * (A,1,A,1).
    hh_bd = (masked_w[:, :, None, :] *
             packed["eye_a"][:, None, :, None]).reshape(AH, AH)

    bundle = packed["bundle"]
    bundle = bundle.at[DIP:DIP + AH, :AH].set(hh_bd.astype(bf16))
    bundle = bundle.at[DIP + 2 * HP + 1, :AH].set(masked_b.astype(bf16))

    # ---- batch tiling: single step at small B, parallel grid at large B -----
    if B <= 256:
        BP = _round_up(B, 8)
        TB = BP
    else:
        TB = 256
        BP = _round_up(B, TB)
    x_p = jnp.zeros((BP, DIP), bf16).at[:B, :D_in].set(x.astype(bf16))

    vmem_limit = max(4 << 20,
                     4 * (TB * DIP * 2 + rows * HP * 2 + TB * HP * 4))

    kernel = functools.partial(_masked_community_kernel, dip=DIP, hp=HP)
    out = pl.pallas_call(
        kernel,
        out_shape=jax.ShapeDtypeStruct((BP, HP), jnp.float32),
        grid=(BP // TB,),
        in_specs=[pl.BlockSpec((TB, DIP), lambda i: (i, 0)),
                  pl.BlockSpec((rows, HP), lambda i: (0, 0))],   # resident bundle
        out_specs=pl.BlockSpec((TB, HP), lambda i: (i, 0)),
        compiler_params=pltpu.CompilerParams(
            dimension_semantics=("parallel",),
            vmem_limit_bytes=int(vmem_limit)),
    )(x_p, bundle)

    return out[:B, :D_out]


def reference_forward(x, params, scores, sparsity):
    """Pure-JAX f32 reference mirroring the PyTorch semantics."""
    thr = _global_threshold(scores, sparsity)
    mw = (scores["w_hh"] >= thr).astype(jnp.float32)
    mb = (scores["b_hh"] >= thr).astype(jnp.float32)
    out = 0.0
    A = params["w_ih"].shape[0]
    for a in range(A):
        h1 = jnp.tanh(x @ params["w_ih"][a] + params["b_ih"][a, 0])
        h2 = jnp.tanh(h1 @ (params["w_hh"][a] * mw[a])
                      + params["b_hh"][a, 0] * mb[a, 0])
        out = out + h2 @ params["w_ro"][a] + params["b_ro"][a, 0]
    return out


def _uniform(key, shape, bound):
    return jax.random.uniform(key, shape, jnp.float32, -bound, bound)


def make_params_and_scores(key, A, D_in, H, D_out):
    ks = jax.random.split(key, 10)
    # Model params: PyTorch nn.Linear default init (U(-1/sqrt(fan_in), ...)),
    # stored transposed as [in, out] for the kernel.
    params = {
        "w_ih": _uniform(ks[0], (A, D_in, H), 1.0 / math.sqrt(D_in)),
        "b_ih": _uniform(ks[1], (A, 1, H), 1.0 / math.sqrt(D_in)),
        "w_hh": _uniform(ks[2], (A, H, H), 1.0 / math.sqrt(H)),
        "b_hh": _uniform(ks[3], (A, 1, H), 1.0 / math.sqrt(H)),
        "w_ro": _uniform(ks[4], (A, H, D_out), 1.0 / math.sqrt(H)),
        "b_ro": _uniform(ks[5], (A, 1, D_out), 1.0 / math.sqrt(H)),
    }
    # Scores (only for 'hh' params: include_ih=False, include_readout=False):
    #  - weight scores: kaiming_uniform_(a=sqrt(5)) -> U(-1/sqrt(fan_in), ...)
    #  - bias scores:   normal(0, 0.01)
    scores = {
        "w_hh": _uniform(ks[6], (A, H, H), 1.0 / math.sqrt(H)),
        "b_hh": 0.01 * jax.random.normal(ks[7], (A, 1, H), jnp.float32),
    }
    return params, scores


if __name__ == "__main__":
    A, B, D_in, H, D_out = 2, 8, 16, 32, 8
    sparsity = 0.05

    key = jax.random.PRNGKey(0)
    kx, kp = jax.random.split(key)
    x = jax.random.normal(kx, (B, D_in), jnp.float32)
    params, scores = make_params_and_scores(kp, A, D_in, H, D_out)

    packed = pack_static(params)   # hoisted: score-independent packing, once
    out = mask_community_forward(x, packed, scores, sparsity)
    out = jax.block_until_ready(out)

    ref = reference_forward(x, params, scores, sparsity)
    assert out.shape == (B, D_out)
    # bf16 MXU operands vs f32 reference -> relaxed tolerance.
    assert jnp.allclose(out, ref, atol=2e-2, rtol=2e-2), "mismatch vs reference"

    print("KERNEL_OK")
</pallas_src>

<mosaic_0001>
module attributes {stable_mosaic.version = 11 : i64} {
  func.func @_masked_community_kernel(%arg0: i32, %arg1: memref<8x16xbf16, #tpu.memory_space<vmem>>, %arg2: memref<288x128xbf16, #tpu.memory_space<vmem>>, %arg3: memref<8x128xf32, #tpu.memory_space<vmem>>) attributes {dimension_semantics = [#tpu.dimension_semantics<parallel>], iteration_bounds = array<i64: 1>, scalar_prefetch = 0 : i64, scratch_operands = 0 : i64, tpu.core_type = #tpu.core_type<tc>, window_params = [{transform_indices = @transform_0, window_bounds = array<i64: 8, 16>}, {pipeline_mode = #tpu.pipeline_mode<synchronous>, transform_indices = @transform_1, window_bounds = array<i64: 288, 128>}, {transform_indices = @transform_2, window_bounds = array<i64: 8, 128>}]} {
    %c0 = arith.constant 0 : index
    %c0_0 = arith.constant 0 : index
    %0 = vector.load %arg1[%c0, %c0_0] : memref<8x16xbf16, #tpu.memory_space<vmem>>, vector<8x16xbf16>
    %c0_1 = arith.constant 0 : index
    %c0_2 = arith.constant 0 : index
    %1 = vector.load %arg2[%c0_1, %c0_2] : memref<288x128xbf16, #tpu.memory_space<vmem>>, vector<16x128xbf16>
    %c16 = arith.constant 16 : index
    %c0_3 = arith.constant 0 : index
    %2 = vector.load %arg2[%c16, %c0_3] : memref<288x128xbf16, #tpu.memory_space<vmem>>, vector<128x128xbf16>
    %c144 = arith.constant 144 : index
    %c0_4 = arith.constant 0 : index
    %3 = vector.load %arg2[%c144, %c0_4] : memref<288x128xbf16, #tpu.memory_space<vmem>>, vector<128x128xbf16>
    %c272 = arith.constant 272 : index
    %c0_5 = arith.constant 0 : index
    %4 = vector.load %arg2[%c272, %c0_5] : memref<288x128xbf16, #tpu.memory_space<vmem>>, vector<16x128xbf16>
    %5 = vector.extract_strided_slice %4 {offsets = [0, 0], sizes = [1, 128], strides = [1, 1]} : vector<16x128xbf16> to vector<1x128xbf16>
    %6 = arith.extf %5 : vector<1x128xbf16> to vector<1x128xf32>
    %7 = vector.extract_strided_slice %4 {offsets = [1, 0], sizes = [1, 128], strides = [1, 1]} : vector<16x128xbf16> to vector<1x128xbf16>
    %8 = arith.extf %7 : vector<1x128xbf16> to vector<1x128xf32>
    %9 = vector.extract_strided_slice %4 {offsets = [2, 0], sizes = [1, 128], strides = [1, 1]} : vector<16x128xbf16> to vector<1x128xbf16>
    %10 = arith.extf %9 : vector<1x128xbf16> to vector<1x128xf32>
    %cst = arith.constant dense<0.000000e+00> : vector<8x128xf32>
    %11 = tpu.matmul %0, %1, %cst {dimension_numbers = #tpu.dot_dimension_numbers<[1], [0], [0], [1], [0, 0, 1, 1], [], []>} : vector<8x16xbf16>, vector<16x128xbf16>, vector<8x128xf32> -> vector<8x128xf32>
    %12 = vector.broadcast %6 : vector<1x128xf32> to vector<8x128xf32>
    %13 = arith.addf %11, %12 : vector<8x128xf32>
    %14 = math.tanh %13 : vector<8x128xf32>
    %15 = arith.truncf %14 : vector<8x128xf32> to vector<8x128xbf16>
    %cst_6 = arith.constant dense<0.000000e+00> : vector<8x128xf32>
    %16 = tpu.matmul %15, %2, %cst_6 {dimension_numbers = #tpu.dot_dimension_numbers<[1], [0], [0], [1], [0, 0, 1, 1], [], []>} : vector<8x128xbf16>, vector<128x128xbf16>, vector<8x128xf32> -> vector<8x128xf32>
    %17 = vector.broadcast %8 : vector<1x128xf32> to vector<8x128xf32>
    %18 = arith.addf %16, %17 : vector<8x128xf32>
    %19 = math.tanh %18 : vector<8x128xf32>
    %20 = arith.truncf %19 : vector<8x128xf32> to vector<8x128xbf16>
    %cst_7 = arith.constant dense<0.000000e+00> : vector<8x128xf32>
    %21 = tpu.matmul %20, %3, %cst_7 {dimension_numbers = #tpu.dot_dimension_numbers<[1], [0], [0], [1], [0, 0, 1, 1], [], []>} : vector<8x128xbf16>, vector<128x128xbf16>, vector<8x128xf32> -> vector<8x128xf32>
    %22 = vector.broadcast %10 : vector<1x128xf32> to vector<8x128xf32>
    %23 = arith.addf %21, %22 : vector<8x128xf32>
    %c0_8 = arith.constant 0 : index
    %c0_9 = arith.constant 0 : index
    %24 = vector.load %arg3[%c0_8, %c0_9] : memref<8x128xf32, #tpu.memory_space<vmem>>, vector<8x128xf32>
    tpu.vector_store %arg3[%c0_8, %c0_9], %23 {strides = array<i32>} : memref<8x128xf32, #tpu.memory_space<vmem>>, vector<8x128xf32>,
    return
  }
  func.func @transform_0(%arg0: i32) -> (i32, i32) {
    %c0_i32 = arith.constant 0 : i32
    %c0_i32_0 = arith.constant 0 : i32
    return %arg0, %c0_i32 : i32, i32
  }
  func.func @transform_1(%arg0: i32) -> (i32, i32) {
    %c0_i32 = arith.constant 0 : i32
    %c0_i32_0 = arith.constant 0 : i32
    %c0_i32_1 = arith.constant 0 : i32
    return %c0_i32, %c0_i32_0 : i32, i32
  }
  func.func @transform_2(%arg0: i32) -> (i32, i32) {
    %c0_i32 = arith.constant 0 : i32
    %c0_i32_0 = arith.constant 0 : i32
    return %arg0, %c0_i32 : i32, i32
  }
}

</mosaic_0001>

<bundles_post_ra>
// kernel: tpu_custom_call.1
= control target key start
LH: loop header
LB: loop body
LE: loop exit
PB: predicated region body
PF: predicated region fallthrough
CT: control target
= control target key end

     0   :  { %7 = vsyncpa [#allocation3], 0  ;;  %s604_s0 = inlined_call_operand.hbm [shape: bf16[8,16], index: 0, kind: input, shape index: {}]   ;;  %s605_s1 = inlined_call_operand.hbm [shape: bf16[288,128], index: 1, kind: input, shape index: {}]   ;;  %s606_s2 = inlined_call_operand.hbm [shape: f32[8,128], index: 2, kind: output, shape index: {}]  }
   0x1   :  { %8 = vsyncpa [#allocation6], 0 }
   0x2   :  { %9 = vsyncpa [#allocation4], 0  ;;  %s519_s9 = smov [#allocation2]   ;;  %s520_s11 = smov [#allocation5]  }
   0x3   :  { %s16_s10 = sshll.u32 %s519_s9, 4  ;;  %s25_s12 = sshll.u32 %s520_s11, 4  ;;  %s17_s10 = int_to_ptr.vmem [resolvable:$true] %s16_s10  ;;  %s541_s12 = int_to_ptr.vmem [resolvable:$true] %s25_s12 }
   0x4   :  { %s447_s15 = scalar_lea.hbm %s604_s0, 64 }
   0x5   :  { %p448_p0 = scmp.ne.s32.totalorder %s604_s0, %s447_s15  ;;  %p451_p1 = scmp.lt.u32.totalorder %s447_s15, %s604_s0 }
   0x7   :  { %p453_p2 = pnand %p451_p1, %p448_p0 }
   0x9   :  { %456 = shalt.err (!%p453_p2)
}
   0xa   :  { %s457_s20 = scalar_lea.vmem %s17_s10, 64  ;;  %p462_p4 = scmp.lt.s32.totalorder %s17_s10, %s17_s10 }
   0xb   :  { %p458_p3 = scmp.ne.s32.totalorder %s17_s10, %s457_s20  ;;  %p463_p5 = scmp.lt.s32.totalorder %s457_s20, %s457_s20 }
   0xd   :  { %p464_p6 = por %p463_p5, %p462_p4 }
   0xf   :  { %p465_p7 = pnand %p464_p6, %p458_p3 }
  0x11   :  { %468 = shalt.err (!%p465_p7)
}
  0x12   :  { %19 = dma.hbm_to_vmem [thread:$0]  %s604_s0, 64, %s17_s10, [#allocation3]  }
  0x13   :  { %s469_s25 = scalar_lea.hbm %s605_s1, 2304 }
  0x14   :  { %p470_p8 = scmp.ne.s32.totalorder %s605_s1, %s469_s25  ;;  %p473_p9 = scmp.lt.u32.totalorder %s469_s25, %s605_s1 }
  0x16   :  { %p475_p10 = pnand %p473_p9, %p470_p8 }
  0x18   :  { %478 = shalt.err (!%p475_p10)
}
  0x19   :  { %s479_s30 = scalar_lea.vmem %s541_s12, 2304  ;;  %p484_p12 = scmp.lt.s32.totalorder %s541_s12, %s541_s12 }
  0x1a   :  { %p480_p11 = scmp.ne.s32.totalorder %s541_s12, %s479_s30  ;;  %p485_p13 = scmp.lt.s32.totalorder %s479_s30, %s479_s30 }
  0x1c   :  { %p486_p0 = por %p485_p13, %p484_p12 }
  0x1e   :  { %p487_p1 = pnand %p486_p0, %p480_p11 }
  0x20   :  { %490 = shalt.err (!%p487_p1)
}
  0x21   :  { %s521_s0 = smov 64   ;;  %s522_s3 = smov 4  }
  0x22   :  { %31 = dma.hbm_to_vmem [thread:$0]  %s605_s1, 2304, %s541_s12, [#allocation6], %s521_s0, %s521_s0, %s522_s3  }
  0x23   :  { %513 = dma.done.wait [#allocation3], 64  }
  0x24   :  { %514 = vsyncadd [#allocation3], 4294967232 }
  0x25   :  { %515 = dma.done.wait [#allocation6], 2304  }
  0x26   :  { %516 = vsyncadd [#allocation6], 4294964992  ;;  %v523_v0 = vmov 0.0   ;;  %vm524_vm0 = vmmov 0   ;;  %v426_v1 = vld [vmem:[#allocation5] sm:$0xff]   ;;  %vm86_vm1 = vcmask 130048   ;;  %v76_v15 = vlaneseq }
  0x27   :  { %373 = vmatprep.subr.bf16.mxu0 %v523_v0  ;;  %375 = vmatprep.mubr.msk.bf16.mxu0 %vm524_vm0, %v523_v0  ;;  %v39_v2 = vld [vmem:[#allocation2] sm:$0xf]  ;;  %v427_v3 = vld [vmem:[#allocation5 + $0x8] sm:$0xff]   ;;  %v428_v4 = vld [vmem:[#allocation5 + $0x10] sm:$0xff]   ;;  %s525_s1 = smov [#allocation7]  }
  0x28   :  { %379 = vmatprep.subr.bf16.mxu1 %v523_v0  ;;  %395 = vmatprep.mubr.msk.bf16.mxu1 %vm524_vm0, %v523_v0  ;;  %v429_v5 = vld [vmem:[#allocation5 + $0x18] sm:$0xff]   ;;  %v430_v6 = vld [vmem:[#allocation5 + $0x20] sm:$0xff]   ;;  %v431_v7 = vld [vmem:[#allocation5 + $0x28] sm:$0xff]   ;;  %v77_v16 = vshrl.u32 %v76_v15, 7  ;;  %s325_s6 = sshll.u32 %s525_s1, 4  ;;  %s326_s6 = int_to_ptr.vmem [resolvable:$true] %s325_s6 }
  0x29   :  { %374 = vmatpush3.bf16.msra.mxu0 %v426_v1  ;;  %380 = vmatpush3.bf16.msra.mxu1 %v427_v3  ;;  %v432_v8 = vld [vmem:[#allocation5 + $0x30] sm:$0xff]   ;;  %v433_v9 = vld [vmem:[#allocation5 + $0x38] sm:$0xff]   ;;  %v434_v10 = vld [vmem:[#allocation5 + $0x40] sm:$0xff]   ;;  %s491_s7 = scalar_lea.vmem %s326_s6, 128  ;;  %p496_p3 = scmp.lt.s32.totalorder %s326_s6, %s326_s6 }
  0x2a   :  { %399 = vmatprep.subr.bf16.mxu0 %v523_v0  ;;  %381 = vmatprep.subr.bf16.mxu1 %v523_v0  ;;  %v435_v11 = vld [vmem:[#allocation5 + $0x48] sm:$0xff]   ;;  %v436_v12 = vld [vmem:[#allocation5 + $0x50] sm:$0xff]   ;;  %v437_v13 = vld [vmem:[#allocation5 + $0x58] sm:$0xff]   ;;  %v78_v19 = vsub.s32 0, %v77_v16  ;;  %v134_v32 = vsub.s32 1, %v77_v16  ;;  %v228_v41 = vsub.s32 2, %v77_v16  ;;  %p492_p2 = scmp.ne.s32.totalorder %s326_s6, %s491_s7  ;;  %p497_p4 = scmp.lt.s32.totalorder %s491_s7, %s491_s7 }
  0x2b   :  { %v438_v14 = vld [vmem:[#allocation5 + $0x60] sm:$0xff]   ;;  %v74_v17 = vld [vmem:[#allocation5 + $0x88] sm:$0xf]  ;;  %v440_v29 = vld [vmem:[#allocation5 + $0x70] sm:$0xff]  }
  0x2c   :  { %376 = vmatmul.mubr.msk.bf16.vlgmr.msra.gmra.mrb[0].mxu0 %vm86_vm1, %v39_v2  ;;  %v75_v18 = vunpack.c.l.bf16 %v74_v17  ;;  %v439_v28 = vld [vmem:[#allocation5 + $0x68] sm:$0xff]   ;;  %v441_v30 = vld [vmem:[#allocation5 + $0x78] sm:$0xff]   ;;  %v442_v31 = vld [vmem:[#allocation5 + $0x80] sm:$0xff]   ;;  %p498_p5 = por %p497_p4, %p496_p3 }
  0x2d   :  { %415 = vmatprep.mubr.msk.bf16.mxu0 %vm524_vm0, %v523_v0  ;;  %382 = vmatpush3.bf16.msra.mxu1 %v428_v4 }
  0x2e   :  { %383 = vmatprep.subr.bf16.mxu1 %v523_v0  ;;  %400 = vmatpush3.bf16.msra.mxu0 %v435_v11  ;;  %v79_v20 = vrot.slane %v75_v18, %v78_v19  ;;  %v135_v33 = vrot.slane %v75_v18, %v134_v32  ;;  %v229_v42 = vrot.slane %v75_v18, %v228_v41  ;;  %p499_p6 = pnand %p498_p5, %p492_p2 }
  0x2f   :  { %401 = vmatprep.subr.bf16.mxu0 %v523_v0 }
  0x31   :  { %384 = vmatpush3.bf16.msra.mxu1 %v429_v5 }
  0x32   :  { %385 = vmatprep.subr.bf16.mxu1 %v523_v0  ;;  %402 = vmatpush3.bf16.msra.mxu0 %v436_v12 }
  0x33   :  { %403 = vmatprep.subr.bf16.mxu0 %v523_v0 }
  0x35   :  { %386 = vmatpush3.bf16.msra.mxu1 %v430_v6 }
  0x36   :  { %387 = vmatprep.subr.bf16.mxu1 %v523_v0  ;;  %404 = vmatpush3.bf16.msra.mxu0 %v437_v13 }
  0x37   :  { %405 = vmatprep.subr.bf16.mxu0 %v523_v0 }
  0x39   :  { %388 = vmatpush3.bf16.msra.mxu1 %v431_v7 }
  0x3a   :  { %389 = vmatprep.subr.bf16.mxu1 %v523_v0  ;;  %406 = vmatpush3.bf16.msra.mxu0 %v438_v14 }
  0x3b   :  { %407 = vmatprep.subr.bf16.mxu0 %v523_v0 }
  0x3d   :  { %390 = vmatpush3.bf16.msra.mxu1 %v432_v8 }
  0x3e   :  { %391 = vmatprep.subr.bf16.mxu1 %v523_v0  ;;  %408 = vmatpush3.bf16.msra.mxu0 %v439_v28 }
  0x3f   :  { %409 = vmatprep.subr.bf16.mxu0 %v523_v0 }
  0x41   :  { %392 = vmatpush3.bf16.msra.mxu1 %v433_v9 }
  0x42   :  { %393 = vmatprep.subr.bf16.mxu1 %v523_v0  ;;  %410 = vmatpush3.bf16.msra.mxu0 %v440_v29 }
  0x43   :  { %411 = vmatprep.subr.bf16.mxu0 %v523_v0 }
  0x45   :  { %394 = vmatpush3.bf16.msra.mxu1 %v434_v10 }
  0x46   :  { %412 = vmatpush3.bf16.msra.mxu0 %v441_v30 }
  0x47   :  { %413 = vmatprep.subr.bf16.mxu0 %v523_v0 }
  0x4a   :  { %414 = vmatpush3.bf16.msra.mxu0 %v442_v31 }
  0xff   :  { %v124_v21 = vpop.f32.mrb[0].mxu0 }
 0x100   :  { %v125_v22 = vadd.f32 %v124_v21, %v79_v20  ;;  %v377_v23 = vpop.f32.mrb[1].mxu0 }
 0x101   :  { %v127_v24 = vpop.f32.mrb[2].mxu0 }
 0x102   :  { %443 = vtanh.f32 %v125_v22  ;;  %v378_v25 = vpop.f32.mrb[3].mxu0 }
 0x10c   :  { %v444_v26 = vpop.eup %443 }
 0x10d   :  { %v131_v27 = vpack.c.bf16 %v444_v26, %v444_v26 }
 0x10f   :  { %396 = vmatmul.mubr.bf16.vlgmr.msra.gmra.mrb[0].mxu1 %v131_v27 }
 0x1e2   :  { %v218_v34 = vpop.f32.mrb[0].mxu1 }
 0x1e3   :  { %v219_v35 = vadd.f32 %v218_v34, %v135_v33  ;;  %v397_v36 = vpop.f32.mrb[1].mxu1 }
 0x1e4   :  { %v221_v37 = vpop.f32.mrb[2].mxu1 }
 0x1e5   :  { %445 = vtanh.f32 %v219_v35  ;;  %v398_v38 = vpop.f32.mrb[3].mxu1 }
 0x1ef   :  { %v446_v39 = vpop.eup %445 }
 0x1f0   :  { %v225_v40 = vpack.c.bf16 %v446_v39, %v446_v39 }
 0x1f2   :  { %416 = vmatmul.mubr.bf16.vlgmr.msra.gmra.mrb[4].mxu0 %v225_v40 }
 0x2c5   :  { %v312_v43 = vpop.f32.mrb[4].mxu0 }
 0x2c6   :  { %v313_v44 = vadd.f32 %v312_v43, %v229_v42  ;;  %v417_v45 = vpop.f32.mrb[5].mxu0 }
 0x2c7   :  { %v315_v46 = vpop.f32.mrb[6].mxu0 }
 0x2c8   :  { %318 = vst [vmem:[#allocation7] sm:$0xff] %v313_v44  ;;  %v418_v47 = vpop.f32.mrb[7].mxu0 }
 0x2c9   :  { %502 = shalt.err (!%p499_p6)
}
 0x2ca   :  { %s503_s10 = scalar_lea.hbm %s606_s2, 128 }
 0x2cb   :  { %p504_p7 = scmp.ne.s32.totalorder %s606_s2, %s503_s10  ;;  %p507_p8 = scmp.lt.u32.totalorder %s503_s10, %s606_s2 }
 0x2cd   :  { %p509_p9 = pnand %p507_p8, %p504_p7 }
 0x2cf   :  { %512 = shalt.err (!%p509_p9)
}
 0x2d0   :  { %328 = dma.vmem_to_hbm [thread:$0]  %s326_s6, 128, %s606_s2, [#allocation4]  }
 0x2d1   :  { %517 = dma.done.wait [#allocation4], 128  }
 0x2d2   :  { %518 = vsyncadd [#allocation4], 4294967168 }
 0x2d3   :  { %332 = vsyncpa [#allocation3], 1 }
 0x2d4   :  { %333 = vsyncpa [#allocation6], 1 }
 0x2d5   :  { %334 = vsyncpa [#allocation4], 1 }

</bundles_post_ra>
